<compile_context>
chip_gen: v7x
topology: tpu7x:2x2x1
jax: 0.10.0
libtpu: 0.0.40
codegen_flags: <defaults>
</compile_context>

<pallas_src>
import functools
import math

import jax
import jax.numpy as jnp
from jax.experimental import pallas as pl
from jax.experimental.pallas import tpu as pltpu

# ---------------- small test configuration ----------------
BS = 2
N_HEADS = 4
CH = 8                      # channels per head
WIDTH = 3 * N_HEADS * CH    # 96
LENGTH = 16                 # sequence length


# ---------------- kernel ----------------
def _flash_qkv_kernel(q_ref, k_ref, v_ref, o_ref, m_sc, l_sc, acc_sc, *, scale):
    # Blocks: q_ref (Hb, ch, TQ), k_ref/v_ref (Hb, ch, TK), o_ref (Hb, ch, TQ)
    # Scratch: m_sc/l_sc (Hb, TQ, 1) f32, acc_sc (Hb, TQ, ch) f32
    ki = pl.program_id(2)

    @pl.when(ki == 0)
    def _init():
        m_sc[...] = jnp.full(m_sc.shape, -jnp.inf, dtype=m_sc.dtype)
        l_sc[...] = jnp.zeros(l_sc.shape, dtype=l_sc.dtype)
        acc_sc[...] = jnp.zeros(acc_sc.shape, dtype=acc_sc.dtype)

    # Scale applied once to q (ch**-0.5) -- mathematically identical to the PyTorch
    # ch**-0.25 on both operands.  bf16 MXU operands, f32 accumulation.
    q = (q_ref[...] * scale).astype(jnp.bfloat16)          # (Hb, ch, TQ)
    k = k_ref[...].astype(jnp.bfloat16)                     # (Hb, ch, TK)
    v = v_ref[...].astype(jnp.bfloat16)                     # (Hb, ch, TK)

    # scores[h, t, s] = sum_c q[h, c, t] * k[h, c, s]  -- one batched MXU issue
    s = jnp.einsum('hct,hcs->hts', q, k,
                   preferred_element_type=jnp.float32)      # (Hb, TQ, TK) f32

    # online softmax update (flash style)
    m_prev = m_sc[...]
    m_new = jnp.maximum(m_prev, jnp.max(s, axis=-1, keepdims=True))
    alpha = jnp.exp(m_prev - m_new)                         # (Hb, TQ, 1)
    p = jnp.exp(s - m_new)                                  # (Hb, TQ, TK)

    l_sc[...] = alpha * l_sc[...] + jnp.sum(p, axis=-1, keepdims=True)

    # pv[h, t, c] = sum_s p[h, t, s] * v[h, c, s]  -- one batched MXU issue.
    # Accumulate in (TQ, ch) layout so alpha (Hb, TQ, 1) broadcasts for free.
    pv = jnp.einsum('hts,hcs->htc', p.astype(jnp.bfloat16), v,
                    preferred_element_type=jnp.float32)     # (Hb, TQ, ch)
    acc_sc[...] = alpha * acc_sc[...] + pv
    m_sc[...] = m_new

    @pl.when(ki == pl.num_programs(2) - 1)
    def _finalize():
        # Exact reciprocal for parity with PyTorch's exact softmax division.
        inv_l = pl.reciprocal(l_sc[...], approx=False)
        out = acc_sc[...] * inv_l                            # (Hb, TQ, ch)
        # One cheap XLU transpose per q-tile keeps the output lane-dense (length last).
        o_ref[...] = jnp.swapaxes(out, 1, 2).astype(o_ref.dtype)
    # TODO(synk): QKVAttentionLegacy.count_flops / count_flops_attn is a thop FLOP
    # profiling hook, not part of the forward pass; nothing to translate.


# ---------------- tiling helpers ----------------
def _pick_seq_tile(length, cap):
    """Largest lane-aligned (multiple of 128) tile <= cap that divides length; full axis
    if length < 128 or no aligned divisor exists (keeps the (8,128) BlockSpec rule)."""
    if length <= cap:
        return length
    t = cap - (cap % 128)
    while t >= 128:
        if length % t == 0:
            return t
        t -= 128
    return length


def _pick_head_chunk(bh, n_q_tiles, per_head_bytes, budget_bytes):
    """Largest divisor of bs*n_heads under the VMEM budget, but keep >= 2 independent
    'parallel' grid steps whenever possible so both v7x TensorCores are fed."""
    best = 1
    for hb in range(1, bh + 1):
        if bh % hb:
            continue
        if hb * per_head_bytes > budget_bytes:
            break
        n_parallel = (bh // hb) * n_q_tiles
        if n_parallel < 2 and bh * n_q_tiles >= 2:
            continue
        best = hb
    return best


# ---------------- wrapper ----------------
def qkv_attention_legacy(qkv, n_heads):
    bs, width, length = qkv.shape
    assert width % (3 * n_heads) == 0
    ch = width // (3 * n_heads)
    bh = bs * n_heads
    scale = ch ** (-0.5)
    itemsize = qkv.dtype.itemsize

    tq = _pick_seq_tile(length, 128)
    tk = _pick_seq_tile(length, 256)
    n_q = length // tq
    n_k = length // tk

    # Per-head VMEM estimate per step (double-buffered q/k/v/out blocks + live
    # intermediates + scratch); budget sized for v7x's 32 MiB scoped VMEM.
    per_head = (2 * (ch * tq + 2 * ch * tk) * itemsize
                + tq * tk * 6
                + tq * ch * 4 + 2 * tq * 4
                + 2 * ch * tq * itemsize)
    hb = _pick_head_chunk(bh, n_q, per_head, budget_bytes=8 * 1024 * 1024)
    g = bh // hb

    # Split q/k/v in the wrapper (free layout plumbing): per-head slices stay
    # tile-aligned regardless of ch, and k/v blocks can follow the kv grid axis.
    x = qkv.reshape(bs, n_heads, 3, ch, length).reshape(bh, 3, ch, length)
    q, k, v = x[:, 0], x[:, 1], x[:, 2]          # each (bh, ch, length)

    cost = pl.CostEstimate(
        flops=4 * bh * length * length * ch,            # QK^T + PV
        transcendentals=bh * length * length,           # exp
        bytes_accessed=4 * bh * ch * length * itemsize)  # read q,k,v + write out

    out = pl.pallas_call(
        functools.partial(_flash_qkv_kernel, scale=scale),
        out_shape=jax.ShapeDtypeStruct((bh, ch, length), qkv.dtype),
        grid_spec=pltpu.PrefetchScalarGridSpec(
            num_scalar_prefetch=0,
            grid=(g, n_q, n_k),
            in_specs=[
                pl.BlockSpec((hb, ch, tq), lambda gi, qi, ki: (gi, 0, qi)),
                pl.BlockSpec((hb, ch, tk), lambda gi, qi, ki: (gi, 0, ki)),
                pl.BlockSpec((hb, ch, tk), lambda gi, qi, ki: (gi, 0, ki)),
            ],
            out_specs=pl.BlockSpec((hb, ch, tq), lambda gi, qi, ki: (gi, 0, qi)),
            scratch_shapes=[
                pltpu.VMEM((hb, tq, 1), jnp.float32),    # running max m
                pltpu.VMEM((hb, tq, 1), jnp.float32),    # running sum l
                pltpu.VMEM((hb, tq, ch), jnp.float32),   # output accumulator
            ]),
        compiler_params=pltpu.CompilerParams(
            dimension_semantics=("parallel", "parallel", "arbitrary"),
            vmem_limit_bytes=32 * 1024 * 1024),
        cost_estimate=cost,
    )(q, k, v)

    return out.reshape(bs, n_heads * ch, length)


# ---------------- pure-JAX reference (mirrors the PyTorch forward) ----------------
def reference(qkv, n_heads):
    bs, width, length = qkv.shape
    ch = width // (3 * n_heads)
    x = qkv.reshape(bs * n_heads, 3 * ch, length)
    q, k, v = x[:, :ch, :], x[:, ch:2 * ch, :], x[:, 2 * ch:, :]
    scale = 1.0 / math.sqrt(math.sqrt(ch))
    weight = jnp.einsum('bct,bcs->bts', q * scale, k * scale)
    weight = jax.nn.softmax(weight, axis=-1)
    a = jnp.einsum('bts,bcs->bct', weight, v)
    return a.reshape(bs, -1, length)


if __name__ == "__main__":
    key = jax.random.PRNGKey(0)
    qkv = jax.random.normal(key, (BS, WIDTH, LENGTH), jnp.float32)

    out = jax.block_until_ready(qkv_attention_legacy(qkv, N_HEADS))
    assert out.shape == (BS, N_HEADS * CH, LENGTH)

    ref = reference(qkv, N_HEADS)
    max_err = float(jnp.max(jnp.abs(out - ref)))
    # bf16 MXU operands with f32 accumulation -> expect ~1e-3 level drift vs f32 ref.
    assert max_err < 2e-2, f"kernel/ref mismatch: max abs err = {max_err}"
    print("KERNEL_OK")
</pallas_src>

<mosaic_0001>
module attributes {stable_mosaic.version = 11 : i64} {
  func.func @_flash_qkv_kernel(%arg0: i32, %arg1: i32, %arg2: i32, %arg3: memref<4x8x16xf32, #tpu.memory_space<vmem>>, %arg4: memref<4x8x16xf32, #tpu.memory_space<vmem>>, %arg5: memref<4x8x16xf32, #tpu.memory_space<vmem>>, %arg6: memref<4x8x16xf32, #tpu.memory_space<vmem>>, %arg7: memref<4x16x1xf32, #tpu.memory_space<vmem>>, %arg8: memref<4x16x1xf32, #tpu.memory_space<vmem>>, %arg9: memref<4x16x8xf32, #tpu.memory_space<vmem>>) attributes {dimension_semantics = [#tpu.dimension_semantics<parallel>, #tpu.dimension_semantics<parallel>, #tpu.dimension_semantics<arbitrary>], iteration_bounds = array<i64: 2, 1, 1>, scalar_prefetch = 0 : i64, scratch_operands = 3 : i64, tpu.core_type = #tpu.core_type<tc>, window_params = [{transform_indices = @transform_0, window_bounds = array<i64: 4, 8, 16>}, {transform_indices = @transform_1, window_bounds = array<i64: 4, 8, 16>}, {transform_indices = @transform_2, window_bounds = array<i64: 4, 8, 16>}, {transform_indices = @transform_3, window_bounds = array<i64: 4, 8, 16>}]} {
    %c0_i32 = arith.constant 0 : i32
    %0 = arith.cmpi eq, %arg2, %c0_i32 : i32
    %1 = arith.extui %0 : i1 to i32
    %c0_i32_0 = arith.constant 0 : i32
    %2 = arith.cmpi ne, %1, %c0_i32_0 : i32
    scf.if %2 {
      %cst_33 = arith.constant 0xFF800000 : f32
      %38 = vector.broadcast %cst_33 : f32 to vector<4x16x1xf32>
      %c0_34 = arith.constant 0 : index
      %c0_35 = arith.constant 0 : index
      %c0_36 = arith.constant 0 : index
      %39 = vector.load %arg7[%c0_34, %c0_35, %c0_36] : memref<4x16x1xf32, #tpu.memory_space<vmem>>, vector<4x16x1xf32>
      tpu.vector_store %arg7[%c0_34, %c0_35, %c0_36], %38 {strides = array<i32>} : memref<4x16x1xf32, #tpu.memory_space<vmem>>, vector<4x16x1xf32>,
      %cst_37 = arith.constant 0.000000e+00 : f32
      %40 = vector.broadcast %cst_37 : f32 to vector<4x16x1xf32>
      %c0_38 = arith.constant 0 : index
      %c0_39 = arith.constant 0 : index
      %c0_40 = arith.constant 0 : index
      %41 = vector.load %arg8[%c0_38, %c0_39, %c0_40] : memref<4x16x1xf32, #tpu.memory_space<vmem>>, vector<4x16x1xf32>
      tpu.vector_store %arg8[%c0_38, %c0_39, %c0_40], %40 {strides = array<i32>} : memref<4x16x1xf32, #tpu.memory_space<vmem>>, vector<4x16x1xf32>,
      %cst_41 = arith.constant 0.000000e+00 : f32
      %42 = vector.broadcast %cst_41 : f32 to vector<4x16x8xf32>
      %c0_42 = arith.constant 0 : index
      %c0_43 = arith.constant 0 : index
      %c0_44 = arith.constant 0 : index
      %43 = vector.load %arg9[%c0_42, %c0_43, %c0_44] : memref<4x16x8xf32, #tpu.memory_space<vmem>>, vector<4x16x8xf32>
      tpu.vector_store %arg9[%c0_42, %c0_43, %c0_44], %42 {strides = array<i32>} : memref<4x16x8xf32, #tpu.memory_space<vmem>>, vector<4x16x8xf32>,
    } else {
    }
    %c0 = arith.constant 0 : index
    %c0_1 = arith.constant 0 : index
    %c0_2 = arith.constant 0 : index
    %3 = vector.load %arg3[%c0, %c0_1, %c0_2] : memref<4x8x16xf32, #tpu.memory_space<vmem>>, vector<4x8x16xf32>
    %cst = arith.constant 0.353553385 : f32
    %4 = vector.broadcast %cst : f32 to vector<4x8x16xf32>
    %5 = arith.mulf %3, %4 : vector<4x8x16xf32>
    %6 = arith.truncf %5 : vector<4x8x16xf32> to vector<4x8x16xbf16>
    %c0_3 = arith.constant 0 : index
    %c0_4 = arith.constant 0 : index
    %c0_5 = arith.constant 0 : index
    %7 = vector.load %arg4[%c0_3, %c0_4, %c0_5] : memref<4x8x16xf32, #tpu.memory_space<vmem>>, vector<4x8x16xf32>
    %8 = arith.truncf %7 : vector<4x8x16xf32> to vector<4x8x16xbf16>
    %c0_6 = arith.constant 0 : index
    %c0_7 = arith.constant 0 : index
    %c0_8 = arith.constant 0 : index
    %9 = vector.load %arg5[%c0_6, %c0_7, %c0_8] : memref<4x8x16xf32, #tpu.memory_space<vmem>>, vector<4x8x16xf32>
    %10 = arith.truncf %9 : vector<4x8x16xf32> to vector<4x8x16xbf16>
    "tpu.trace_start"() <{level = 10 : i32, message = "hct,hcs->hts"}> : () -> ()
    %cst_9 = arith.constant dense<0.000000e+00> : vector<4x16x16xf32>
    %11 = tpu.matmul %6, %8, %cst_9 {dimension_numbers = #tpu.dot_dimension_numbers<[1], [1], [2], [2], [0, 0, 0, 2, 1, 2], [0], [0]>} : vector<4x8x16xbf16>, vector<4x8x16xbf16>, vector<4x16x16xf32> -> vector<4x16x16xf32>
    "tpu.trace_stop"() : () -> ()
    %c0_10 = arith.constant 0 : index
    %c0_11 = arith.constant 0 : index
    %c0_12 = arith.constant 0 : index
    %12 = vector.load %arg7[%c0_10, %c0_11, %c0_12] : memref<4x16x1xf32, #tpu.memory_space<vmem>>, vector<4x16x1xf32>
    %cst_13 = arith.constant dense<0xFF800000> : vector<4x16xf32>
    %13 = vector.multi_reduction <maximumf>, %11, %cst_13 [2] : vector<4x16x16xf32> to vector<4x16xf32>
    %14 = vector.shape_cast %13 : vector<4x16xf32> to vector<4x16x1xf32>
    %15 = arith.maximumf %12, %14 : vector<4x16x1xf32>
    %16 = arith.subf %12, %15 : vector<4x16x1xf32>
    %17 = math.exp %16 : vector<4x16x1xf32>
    %18 = vector.broadcast %15 : vector<4x16x1xf32> to vector<4x16x16xf32>
    %19 = arith.subf %11, %18 : vector<4x16x16xf32>
    %20 = math.exp %19 : vector<4x16x16xf32>
    %c0_14 = arith.constant 0 : index
    %c0_15 = arith.constant 0 : index
    %c0_16 = arith.constant 0 : index
    %21 = vector.load %arg8[%c0_14, %c0_15, %c0_16] : memref<4x16x1xf32, #tpu.memory_space<vmem>>, vector<4x16x1xf32>
    %22 = arith.mulf %17, %21 : vector<4x16x1xf32>
    %cst_17 = arith.constant dense<0.000000e+00> : vector<4x16xf32>
    %23 = vector.multi_reduction <add>, %20, %cst_17 [2] : vector<4x16x16xf32> to vector<4x16xf32>
    %24 = vector.shape_cast %23 : vector<4x16xf32> to vector<4x16x1xf32>
    %25 = arith.addf %22, %24 : vector<4x16x1xf32>
    %c0_18 = arith.constant 0 : index
    %c0_19 = arith.constant 0 : index
    %c0_20 = arith.constant 0 : index
    %26 = vector.load %arg8[%c0_18, %c0_19, %c0_20] : memref<4x16x1xf32, #tpu.memory_space<vmem>>, vector<4x16x1xf32>
    tpu.vector_store %arg8[%c0_18, %c0_19, %c0_20], %25 {strides = array<i32>} : memref<4x16x1xf32, #tpu.memory_space<vmem>>, vector<4x16x1xf32>,
    %27 = arith.truncf %20 : vector<4x16x16xf32> to vector<4x16x16xbf16>
    "tpu.trace_start"() <{level = 10 : i32, message = "hts,hcs->htc"}> : () -> ()
    %cst_21 = arith.constant dense<0.000000e+00> : vector<4x16x8xf32>
    %28 = tpu.matmul %27, %10, %cst_21 {dimension_numbers = #tpu.dot_dimension_numbers<[2], [2], [1], [1], [0, 0, 0, 1, 1, 1], [0], [0]>} : vector<4x16x16xbf16>, vector<4x8x16xbf16>, vector<4x16x8xf32> -> vector<4x16x8xf32>
    "tpu.trace_stop"() : () -> ()
    %c0_22 = arith.constant 0 : index
    %c0_23 = arith.constant 0 : index
    %c0_24 = arith.constant 0 : index
    %29 = vector.load %arg9[%c0_22, %c0_23, %c0_24] : memref<4x16x8xf32, #tpu.memory_space<vmem>>, vector<4x16x8xf32>
    %30 = vector.broadcast %17 : vector<4x16x1xf32> to vector<4x16x8xf32>
    %31 = arith.mulf %30, %29 : vector<4x16x8xf32>
    %32 = arith.addf %31, %28 : vector<4x16x8xf32>
    %c0_25 = arith.constant 0 : index
    %c0_26 = arith.constant 0 : index
    %c0_27 = arith.constant 0 : index
    %33 = vector.load %arg9[%c0_25, %c0_26, %c0_27] : memref<4x16x8xf32, #tpu.memory_space<vmem>>, vector<4x16x8xf32>
    tpu.vector_store %arg9[%c0_25, %c0_26, %c0_27], %32 {strides = array<i32>} : memref<4x16x8xf32, #tpu.memory_space<vmem>>, vector<4x16x8xf32>,
    %c0_28 = arith.constant 0 : index
    %c0_29 = arith.constant 0 : index
    %c0_30 = arith.constant 0 : index
    %34 = vector.load %arg7[%c0_28, %c0_29, %c0_30] : memref<4x16x1xf32, #tpu.memory_space<vmem>>, vector<4x16x1xf32>
    tpu.vector_store %arg7[%c0_28, %c0_29, %c0_30], %15 {strides = array<i32>} : memref<4x16x1xf32, #tpu.memory_space<vmem>>, vector<4x16x1xf32>,
    %c0_i32_31 = arith.constant 0 : i32
    %35 = arith.cmpi eq, %arg2, %c0_i32_31 : i32
    %36 = arith.extui %35 : i1 to i32
    %c0_i32_32 = arith.constant 0 : i32
    %37 = arith.cmpi ne, %36, %c0_i32_32 : i32
    scf.if %37 {
      %c0_33 = arith.constant 0 : index
      %c0_34 = arith.constant 0 : index
      %c0_35 = arith.constant 0 : index
      %38 = vector.load %arg8[%c0_33, %c0_34, %c0_35] : memref<4x16x1xf32, #tpu.memory_space<vmem>>, vector<4x16x1xf32>
      %39 = tpu.reciprocal %38 : vector<4x16x1xf32> -> vector<4x16x1xf32>
      %c0_36 = arith.constant 0 : index
      %c0_37 = arith.constant 0 : index
      %c0_38 = arith.constant 0 : index
      %40 = vector.load %arg9[%c0_36, %c0_37, %c0_38] : memref<4x16x8xf32, #tpu.memory_space<vmem>>, vector<4x16x8xf32>
      %41 = vector.broadcast %39 : vector<4x16x1xf32> to vector<4x16x8xf32>
      %42 = arith.mulf %40, %41 : vector<4x16x8xf32>
      %43 = tpu.transpose %42, [0, 2, 1] : vector<4x16x8xf32> -> vector<4x8x16xf32>
      %c0_39 = arith.constant 0 : index
      %c0_40 = arith.constant 0 : index
      %c0_41 = arith.constant 0 : index
      %44 = vector.load %arg6[%c0_39, %c0_40, %c0_41] : memref<4x8x16xf32, #tpu.memory_space<vmem>>, vector<4x8x16xf32>
      tpu.vector_store %arg6[%c0_39, %c0_40, %c0_41], %43 {strides = array<i32>} : memref<4x8x16xf32, #tpu.memory_space<vmem>>, vector<4x8x16xf32>,
    } else {
    }
    return
  }
  func.func @transform_0(%arg0: i32, %arg1: i32, %arg2: i32) -> (i32, i32, i32) {
    %c0_i32 = arith.constant 0 : i32
    %c0_i32_0 = arith.constant 0 : i32
    return %arg0, %c0_i32, %arg1 : i32, i32, i32
  }
  func.func @transform_1(%arg0: i32, %arg1: i32, %arg2: i32) -> (i32, i32, i32) {
    %c0_i32 = arith.constant 0 : i32
    %c0_i32_0 = arith.constant 0 : i32
    return %arg0, %c0_i32, %arg2 : i32, i32, i32
  }
  func.func @transform_2(%arg0: i32, %arg1: i32, %arg2: i32) -> (i32, i32, i32) {
    %c0_i32 = arith.constant 0 : i32
    %c0_i32_0 = arith.constant 0 : i32
    return %arg0, %c0_i32, %arg2 : i32, i32, i32
  }
  func.func @transform_3(%arg0: i32, %arg1: i32, %arg2: i32) -> (i32, i32, i32) {
    %c0_i32 = arith.constant 0 : i32
    %c0_i32_0 = arith.constant 0 : i32
    return %arg0, %c0_i32, %arg1 : i32, i32, i32
  }
}

</mosaic_0001>

<bundles_post_ra>
// kernel: tpu_custom_call.1
= control target key start
LH: loop header
LB: loop body
LE: loop exit
PB: predicated region body
PF: predicated region fallthrough
CT: control target
= control target key end

     0   :  { %s2415_s0 = inlined_call_operand.hbm [shape: f32[8,8,16], index: 0, kind: input, shape index: {}]   ;;  %s2416_s1 = inlined_call_operand.hbm [shape: f32[8,8,16], index: 1, kind: input, shape index: {}]   ;;  %s2417_s2 = inlined_call_operand.hbm [shape: f32[8,8,16], index: 2, kind: input, shape index: {}]   ;;  %s2418_s3 = inlined_call_operand.hbm [shape: f32[8,8,16], index: 3, kind: output, shape index: {}]  }
   0x1   :  { %2428 = sst [smem:[#allocation18_spill]] %s2416_s1 }
   0x2   :  { %8 = vsyncpa [#allocation6], 0 }
   0x3   :  { %10 = vsyncpa [#allocation6 + $0x1], 0 }
   0x4   :  { %11 = vsyncpa [#allocation9], 0 }
   0x5   :  { %13 = vsyncpa [#allocation9 + $0x1], 0 }
   0x6   :  { %14 = vsyncpa [#allocation7], 0 }
   0x7   :  { %16 = vsyncpa [#allocation7 + $0x1], 0  ;;  %s1867_s12 = smov 0   ;;  %s1869_s13 = smov 0  }
   0x8   :  { %s1871_s14 = smov 0   ;;  %s1873_s15 = smov 0  }
   0x9   :  { %s1875_s16 = smov 0   ;;  %s1877_s17 = smov 0  }
   0xa LB: > { %2429 = sst [smem:[#allocation15_spill]] %s1829_s16  ;;  %s1898_s18 = sadd.s32 4294967295, %s1833_s17   ;;  %s1833_s17 = sphi %s1877_s17, %s22_s17   ;;  %s1829_s16 = sphi %s1875_s16, %s2452_s16   ;;  %s1825_s15 = sphi %s1873_s15, %s2451_s15   ;;  %s1821_s14 = sphi %s1871_s14, %s2455_s14   ;;  %s1817_s13 = sphi %s1869_s13, %s2454_s13   ;;  %s1813_s12 = sphi %s1867_s12, %s2453_s12  }
   0xb   : > { %s1429_s19 = sadd.s32 4294967294, %s1833_s17   ;;  %s41_s20 = sadd.s32 1, %s1829_s16 }
   0xc   : > { %s50_s21 = sadd.s32 1, %s1821_s14  ;;  %p43_p0 = scmp.ge.s32.totalorder %s41_s20, 2 }
   0xd   : > { %p57_p1 = scmp.ne.s32.totalorder %s1821_s14, %s1817_s13  ;;  %p58_p2 = scmp.eq.s32.totalorder %s1833_s17, 0 }
   0xe   : > { %p63_p3 = scmp.ne.s32.totalorder %s1817_s13, %s1813_s12  ;;  %s2457_s20 = smov (%p43_p0, %s41_s20), 0 }
   0xf   : > { %2430 = sst [smem:[#allocation16_spill]] %s2457_s20  ;;  %p1910_p4 = por %p58_p2, %p57_p1 }
  0x10   : > { %p64_p5 = scmp.eq.s32.totalorder %s1898_s18, 0  ;;  %s45_s23 = ssub.s32 %s1829_s16, %s2457_s20 }
  0x11   : > { %p145_p6 = scmp.eq.s32.totalorder %s1898_s18, 1  ;;  %p48_p7 = scmp.eq.s32.totalorder %s45_s23, 0 }
  0x12   : > { %p1918_p8 = por %p64_p5, %p63_p3  ;;  %p151_p10 = scmp.eq.s32.totalorder %s1429_s19, 1 }
  0x13   : > { %p1922_p9 = por %p145_p6, %p57_p1  ;;  %p1549_p13 = scmp.lt.s32.totalorder %s1833_s17, 2 }
  0x14   : > { %s2432_s24 = scalar_select %p1918_p8, 1, 0 }
  0x15   : > { %s2433_s25 = scalar_select %p1922_p9, 1, 0 }
  0x16   : > { %s1927_s26 = scalar_select %p48_p7, %s1821_s14, %s50_s21  }
  0x17   : > { %p1929_p11 = por %p151_p10, %p63_p3  ;;  %s2421_s28 = sand.u32 1, %s1821_s14  }
  0x18   : > { %2434 = sst [smem:[#allocation17_spill]] %s1927_s26  ;;  %s1938_s29 = sshll.u32 %s2421_s28, 5 }
  0x19   : > { %s2435_s27 = scalar_select %p1929_p11, 1, 0 }
  0x1a   : > { %s1941_s30 = sshll.u32 %s1829_s16, 9  ;;  %p1945_p0 = pnand %p1549_p13, %p1910_p4 }
  0x1b   : > { %s193_s5 = sand.u32 1, %s1833_s17   ;;  %s2437_s1 = sld [smem:[#allocation18_spill]] }
  0x1c   : > { %s197_s9 = scalar_lea.vmem [#allocation8], %s1938_s29  ;;  %s1961_s11 = scalar_lea.sflag [#allocation9], %s193_s5 }
  0x1d   : > { %s205_s10 = sshll.u32 %s197_s9, 4  ;;  %p1967_p4 = pneg %p1945_p0  ;;  %s1958_s10 = int_to_ptr.vmem [resolvable:$true] %s205_s10 }
  0x21   : > { %s1954_s8 = scalar_lea.hbm %s2437_s1, %s1941_s30  ;;  %s1662_s6 = scalar_lea.hbm %s2437_s1, 1024 }
  0x22   : > { %s1657_s19 = scalar_lea.hbm %s1954_s8, 512  ;;  %p1663_p7 = scmp.lt.u32.totalorder %s1954_s8, %s2437_s1 }
  0x23   : > { %p1658_p3 = scmp.ne.s32.totalorder %s1954_s8, %s1657_s19  ;;  %p1664_p10 = scmp.lt.u32.totalorder %s1662_s6, %s1657_s19 }
  0x24   : > { %p1666_p12 = scmp.lt.u32.totalorder %s1657_s19, %s1954_s8 }
  0x25   : > { %p1660_p5 = pnand %p1967_p4, %p1658_p3  ;;  %p1665_p13 = por %p1664_p10, %p1663_p7 }
  0x27   : > { %p1661_p6 = pneg %p1660_p5  ;;  %p1667_p1 = por %p1666_p12, %p1665_p13 }
  0x29   : > { %p1668_p2 = pnand %p1667_p1, %p1661_p6 }
  0x2b   : > { %1671 = shalt.err (!%p1668_p2)
}
  0x2c   : > { %s1672_s5 = scalar_lea.vmem %s1958_s10, 512  ;;  %s1835_s22 = smov [#allocation8]  }
  0x2d   : > { %p1673_p3 = scmp.ne.s32.totalorder %s1958_s10, %s1672_s5  ;;  %s1677_s23 = sshll.u32 %s1835_s22, 4  ;;  %s1678_s23 = int_to_ptr.vmem [resolvable:$false] %s1677_s23 }
  0x2e   : > { %s1679_s7 = scalar_lea.vmem %s1678_s23, 1024  ;;  %p1680_p9 = scmp.lt.s32.totalorder %s1958_s10, %s1678_s23 }
  0x2f   : > { %p1675_p5 = pnand %p1673_p3, %p1967_p4  ;;  %p1681_p8 = scmp.lt.s32.totalorder %s1679_s7, %s1672_s5 }
  0x31   : > { %p1676_p11 = pneg %p1675_p5  ;;  %p1682_p7 = por %p1681_p8, %p1680_p9 }
  0x33   : > { %p1683_p10 = pnand %p1682_p7, %p1676_p11 }
  0x35   : > { %1686 = shalt.err (!%p1683_p10)
}
  0x36   : > { %s2422_s19 = smov 128   ;;  %s2424_s6 = smov 8  }
  0x37   : > { %1541 = dma.hbm_to_vmem [thread:$0]  (!%p1945_p0), %s1954_s8, 512, %s1958_s10, %s1961_s11, %s2422_s19, %s2422_s19, %s2424_s6  }
  0x38   : > { %p2439_p8 = scmp.lt.s32.totalorder %s1833_s17, 3  ;;  %p2440_p9 = scmp.ge.s32.totalorder %s1833_s17, 1 }
  0x39   : > { %s2006_s23 = scalar_lea.hbm %s2415_s0, %s1941_s30  ;;  %s175_s7 = scalar_lea.vmem [#allocation5], %s1938_s29 }
  0x3a   : > { %p1998_p11 = pnand %p2440_p9, %p2439_p8  ;;  %s183_s28 = sshll.u32 %s175_s7, 4  ;;  %s2009_s28 = int_to_ptr.vmem [resolvable:$true] %s183_s28 }
  0x3b   : > { %s2015_s19 = scalar_lea.hbm %s2417_s2, %s1941_s30  ;;  %s2442_s6 = sand.u32 1, %s1821_s14  }
  0x3c   : > { %s2441_s9 = scalar_select %p1998_p11, 1, 0 }
  0x3d   : > { %s2019_s1 = scalar_lea.sflag [#allocation6], %s2442_s6  ;;  %s1687_s20 = scalar_lea.hbm %s2006_s23, 512 }
  0x3e   : > { %p1688_p12 = scmp.ne.s32.totalorder %s2006_s23, %s1687_s20  ;;  %s1692_s16 = scalar_lea.hbm %s2415_s0, 1024 }
  0x3f   : > { %p1693_p6 = scmp.lt.u32.totalorder %s2006_s23, %s2415_s0  ;;  %p1694_p13 = scmp.lt.u32.totalorder %s1692_s16, %s1687_s20 }
  0x40   : > { %p1690_p1 = pnand %p1688_p12, %p1967_p4  ;;  %p1696_p5 = scmp.lt.u32.totalorder %s1687_s20, %s2006_s23 }
  0x41   : > { %p1695_p3 = por %p1694_p13, %p1693_p6 }
  0x42   : > { %p1691_p2 = pneg %p1690_p1 }
  0x43   : > { %p1697_p7 = por %p1696_p5, %p1695_p3 }
  0x45   : > { %p1698_p10 = pnand %p1697_p7, %p1691_p2 }
  0x47   : > { %1701 = shalt.err (!%p1698_p10)
}
  0x48   : > { %s1702_s30 = scalar_lea.vmem %s2009_s28, 512  ;;  %s1838_s6 = smov [#allocation5]  }
  0x49   : > { %p1703_p8 = scmp.ne.s32.totalorder %s2009_s28, %s1702_s30  ;;  %s1707_s8 = sshll.u32 %s1838_s6, 4  ;;  %s1708_s8 = int_to_ptr.vmem [resolvable:$false] %s1707_s8 }
  0x4a   : > { %s1709_s26 = scalar_lea.vmem %s1708_s8, 1024  ;;  %p1710_p1 = scmp.lt.s32.totalorder %s2009_s28, %s1708_s8 }
  0x4b   : > { %p1705_p9 = pnand %p1703_p8, %p1967_p4  ;;  %p1711_p11 = scmp.lt.s32.totalorder %s1709_s26, %s1702_s30 }
  0x4d   : > { %p1706_p12 = pneg %p1705_p9  ;;  %p1712_p6 = por %p1711_p11, %p1710_p1 }
  0x4f   : > { %p1713_p13 = pnand %p1712_p6, %p1706_p12 }
  0x51   : > { %1716 = shalt.err (!%p1713_p13)
}
  0x52   : > { %s2443_s16 = smov 8   ;;  %s2444_s20 = smov 128  }
  0x53   : > { %1538 = dma.hbm_to_vmem [thread:$0]  (!%p1945_p0), %s2006_s23, 512, %s2009_s28, %s2019_s1, %s2444_s20, %s2444_s20, %s2443_s16  }
  0x54   : > { %s219_s10 = scalar_lea.vmem [#allocation10], %s1938_s29  ;;  %s1717_s22 = scalar_lea.hbm %s2015_s19, 512 }
  0x55   : > { %s227_s5 = sshll.u32 %s219_s10, 4  ;;  %p1718_p11 = scmp.ne.s32.totalorder %s2015_s19, %s1717_s22  ;;  %s2047_s5 = int_to_ptr.vmem [resolvable:$true] %s227_s5 }
  0x56   : > { %s1722_s6 = scalar_lea.hbm %s2417_s2, 1024  ;;  %p1723_p5 = scmp.lt.u32.totalorder %s2015_s19, %s2417_s2 }
  0x57   : > { %p1720_p2 = pnand %p1718_p11, %p1967_p4  ;;  %p1724_p7 = scmp.lt.u32.totalorder %s1722_s6, %s1717_s22 }
  0x58   : > { %p1726_p8 = scmp.lt.u32.totalorder %s1717_s22, %s2015_s19 }
  0x59   : > { %p1721_p3 = pneg %p1720_p2  ;;  %p1725_p10 = por %p1724_p7, %p1723_p5 }
  0x5b   : > { %p1727_p9 = por %p1726_p8, %p1725_p10 }
  0x5d   : > { %p1728_p12 = pnand %p1727_p9, %p1721_p3 }
  0x5f   : > { %1731 = shalt.err (!%p1728_p12)
}
  0x60   : > { %s1732_s1 = scalar_lea.vmem %s2047_s5, 512  ;;  %s1839_s28 = smov [#allocation10]  }
  0x61   : > { %p1733_p1 = scmp.ne.s32.totalorder %s2047_s5, %s1732_s1  ;;  %s1737_s29 = sshll.u32 %s1839_s28, 4  ;;  %s1738_s29 = int_to_ptr.vmem [resolvable:$false] %s1737_s29 }
  0x62   : > { %s1739_s23 = scalar_lea.vmem %s1738_s29, 1024  ;;  %p1740_p11 = scmp.lt.s32.totalorder %s2047_s5, %s1738_s29 }
  0x63   : > { %p1735_p6 = pnand %p1733_p1, %p1967_p4  ;;  %p1741_p2 = scmp.lt.s32.totalorder %s1739_s23, %s1732_s1 }
  0x65   : > { %p1736_p13 = pneg %p1735_p6  ;;  %p1742_p5 = por %p1741_p2, %p1740_p11 }
  0x67   : > { %p1743_p7 = pnand %p1742_p5, %p1736_p13 }
  0x69   : > { %1746 = shalt.err (!%p1743_p7)
}
  0x6a   : > { %1544 = dma.hbm_to_vmem [thread:$0]  (!%p1945_p0), %s2015_s19, 512, %s2047_s5, %s1961_s11, %s2444_s20, %s2444_s20, %s2443_s16  }
  0x6b   : > { %p2445_p4 = scmp.ne.s32.totalorder %s2441_s9, 0 }
  0x6c   : > { %s2077_s21 = sand.u32 (!%p2445_p4), 1, %s1817_s13   ;;  %p2446_p3 = scmp.ne.s32.totalorder (!%p2445_p4), %s2432_s24, 0 }
  0x6d   : > { %239 = sbr.rel (%p2445_p4) target bundleno = 1194 (0x4aa), region = 32  ;;  %s2080_s10 = sshll.u32 (!%p2445_p4), %s2077_s21, 5 }
  0x6e   : > { %s242_s4 = scalar_lea.sflag (!%p2445_p4), [#allocation6], %s2077_s21  ;;  %s245_s22 = scalar_lea.vmem (!%p2445_p4), [#allocation5], %s2080_s10 }
  0x74   : > { %1800 = dma.done.wait (%p2446_p3), %s242_s4, 512  }
  0x75   : > { %1802 = vsyncadd (%p2446_p3), %s242_s4, 4294966784  ;;  %s250_s11 = sand.u32 1, %s1898_s18   ;;  %s2090_s9 = scalar_lea.vmem [#allocation8], %s2080_s10 }
  0x76   : > { %s251_s19 = scalar_lea.sflag [#allocation9], %s250_s11 }
  0x77   : > { %1804 = dma.done.wait (%p2446_p3), %s251_s19, 1024  }
  0x78   : > { %1806 = vsyncadd (%p2446_p3), %s251_s19, 4294966272  ;;  %vm322_vm0 = vcmask 64512   ;;  %v1840_v0 = vmov 0.0   ;;  %vm1841_vm1 = vmmov 0   ;;  %v331_v1 = vld [vmem:[%s245_s22] sm:$0xff]  ;;  %v332_v2 = vld [vmem:[%s245_s22 + $0x8] sm:$0xff] }
  0x79   : > { %1479 = vmatprep.subr.bf16.mxu0 %v1840_v0  ;;  %1481 = vmatprep.mubr.msk.bf16.mxu0 %vm1841_vm1, %v1840_v0  ;;  %323 = vst.msk [vmem:[#allocation4] sm:$0xff] %vm322_vm0, %v1840_v0  ;;  %324 = vst.msk [vmem:[#allocation4 + $0x8] sm:$0xff] %vm322_vm0, %v1840_v0  ;;  %v333_v3 = vld [vmem:[%s245_s22 + $0x10] sm:$0xff]  ;;  %v335_v4 = vmul.f32 0.35355338, %v331_v1  ;;  %v334_v7 = vld [vmem:[%s245_s22 + $0x18] sm:$0xff] }
  0x7a   : > { %325 = vst.msk [vmem:[#allocation4 + $0x10] sm:$0xff] %vm322_vm0, %v1840_v0  ;;  %326 = vst.msk [vmem:[#allocation4 + $0x18] sm:$0xff] %vm322_vm0, %v1840_v0  ;;  %1485 = vmatprep.subr.bf16.mxu1 %v1840_v0  ;;  %1487 = vmatprep.mubr.msk.bf16.mxu1 %vm1841_vm1, %v1840_v0  ;;  %v336_v5 = vmul.f32 0.35355338, %v332_v2  ;;  %v337_v6 = vmul.f32 0.35355338, %v333_v3 }
  0x7b   : > { %327 = vst.msk [vmem:[#allocation4 + $0x20] sm:$0xff] %vm322_vm0, %v1840_v0  ;;  %328 = vst.msk [vmem:[#allocation4 + $0x28] sm:$0xff] %vm322_vm0, %v1840_v0  ;;  %v343_v8 = vld [vmem:[%s2090_s9] sm:$0xff]  ;;  %v344_v9 = vld [vmem:[%s2090_s9 + $0x8] sm:$0xff]  ;;  %v339_v10 = vpack.c.bf16 %v335_v4, %v335_v4  ;;  %v338_v12 = vmul.f32 0.35355338, %v334_v7 }
  0x7c   : > { %329 = vst.msk [vmem:[#allocation4 + $0x30] sm:$0xff] %vm322_vm0, %v1840_v0  ;;  %330 = vst.msk [vmem:[#allocation4 + $0x38] sm:$0xff] %vm322_vm0, %v1840_v0  ;;  %v341_v11 = vpack.c.bf16 %v337_v6, %v337_v6  ;;  %vm379_vm2 = vcmask 1043456   ;;  %v347_v13 = vpack.c.bf16 %v343_v8, %v343_v8  ;;  %v348_v14 = vpack.c.bf16 %v344_v9, %v344_v9  ;;  %v345_v19 = vld [vmem:[%s2090_s9 + $0x10] sm:$0xff]  ;;  %v346_v21 = vld [vmem:[%s2090_s9 + $0x18] sm:$0xff]  ;;  %s2275_s18 = scalar_lea.vmem [#allocation10], %s2080_s10 }
  0x7d   : > { %359 = vxpose.xlu0.c.b16.start.end [1/1] (short) (narrow) %v339_v10, 16  ;;  %v340_v15 = vpack.c.bf16 %v336_v5, %v336_v5  ;;  %v342_v16 = vpack.c.bf16 %v338_v12, %v338_v12  ;;  %v349_v20 = vpack.c.bf16 %v345_v19, %v345_v19  ;;  %v350_v23 = vpack.c.bf16 %v346_v21, %v346_v21  ;;  %s295_s24 = scalar_lea.vmem [#allocation11], %s2080_s10  ;;  %s1462_s20 = sshll.u32 %s1825_s15, 9 }
  0x7e   : > { %487 = vxpose.xlu1.c.b16.start.end [1/1] (short) (narrow) %v341_v11, 16  ;;  %v381_v17 = vsel %vm379_vm2, %v347_v13, 0  ;;  %v444_v18 = vsel %vm379_vm2, %v348_v14, 0  ;;  %vm305_vm3 = vcmask 7168   ;;  %v1842_v29 = vmov -inf   ;;  %s1293_s16 = sshll.u32 %s295_s24, 4  ;;  %s2365_s30 = scalar_lea.hbm %s2418_s3, %s1462_s20  ;;  %s2360_s16 = int_to_ptr.vmem [resolvable:$true] %s1293_s16 }
  0x7f   : > { %1480 = vmatpush3.bf16.msra.mxu0 %v381_v17  ;;  %1486 = vmatpush3.bf16.msra.mxu1 %v444_v18  ;;  %v507_v22 = vsel %vm379_vm2, %v349_v20, 0  ;;  %v570_v25 = vsel %vm379_vm2, %v350_v23, 0  ;;  %306 = vst.msk [vmem:[#allocation2] sm:$0xff] %vm305_vm3, %v1842_v29  ;;  %307 = vst.msk [vmem:[#allocation2 + $0x8] sm:$0xff] %vm305_vm3, %v1842_v29  ;;  %vm621_vm4 = vcmask 130048   ;;  %v1843_v54 = vmov 0  }
  0x80   : > { %1491 = vmatprep.subr.bf16.mxu0 %v1840_v0  ;;  %1497 = vmatprep.subr.bf16.mxu1 %v1840_v0  ;;  %308 = vst.msk [vmem:[#allocation2 + $0x10] sm:$0xff] %vm305_vm3, %v1842_v29  ;;  %309 = vst.msk [vmem:[#allocation2 + $0x18] sm:$0xff] %vm305_vm3, %v1842_v29  ;;  %s1279_s6 = scalar_lea.sflag [#allocation7], %s2077_s21  ;;  %s1747_s8 = scalar_lea.vmem %s2360_s16, 512 }
  0x81   : > { %424 = vxpose.xlu0.c.b16.start.end [1/1] (short) (narrow) %v340_v15, 16  ;;  %310 = vst.msk [vmem:[#allocation2 + $0x20] sm:$0xff] %vm305_vm3, %v1842_v29  ;;  %311 = vst.msk [vmem:[#allocation2 + $0x28] sm:$0xff] %vm305_vm3, %v1842_v29  ;;  %p1748_p0 = scmp.ne.s32.totalorder %s2360_s16, %s1747_s8  ;;  %p2447_p10 = scmp.ne.s32.totalorder %s2433_s25, 0 }
  0x82   : > { %550 = vxpose.xlu1.c.b16.start.end [1/1] (short) (narrow) %v342_v16, 16  ;;  %312 = vst.msk [vmem:[#allocation2 + $0x30] sm:$0xff] %vm305_vm3, %v1842_v29  ;;  %313 = vst.msk [vmem:[#allocation2 + $0x38] sm:$0xff] %vm305_vm3, %v1842_v29  ;;  %s1844_s15 = smov [#allocation11]  }
  0x83   : > { %314 = vst.msk [vmem:[#allocation3] sm:$0xff] %vm305_vm3, %v1840_v0  ;;  %315 = vst.msk [vmem:[#allocation3 + $0x8] sm:$0xff] %vm305_vm3, %v1840_v0  ;;  %p1749_p8 = pnand %p1748_p0, %p2447_p10  ;;  %s1751_s26 = sshll.u32 %s1844_s15, 4  ;;  %s1752_s26 = int_to_ptr.vmem [resolvable:$false] %s1751_s26 }
  0x84   : > { %316 = vst.msk [vmem:[#allocation3 + $0x10] sm:$0xff] %vm305_vm3, %v1840_v0  ;;  %317 = vst.msk [vmem:[#allocation3 + $0x18] sm:$0xff] %vm305_vm3, %v1840_v0  ;;  %s1753_s1 = scalar_lea.vmem %s1752_s26, 1024  ;;  %p1754_p12 = scmp.lt.s32.totalorder %s2360_s16, %s1752_s26 }
  0x85   : > { %318 = vst.msk [vmem:[#allocation3 + $0x20] sm:$0xff] %vm305_vm3, %v1840_v0  ;;  %319 = vst.msk [vmem:[#allocation3 + $0x28] sm:$0xff] %vm305_vm3, %v1840_v0  ;;  %p1750_p9 = pneg %p1749_p8  ;;  %p1755_p1 = scmp.lt.s32.totalorder %s1753_s1, %s1747_s8 }
  0x86   : > { %320 = vst.msk [vmem:[#allocation3 + $0x30] sm:$0xff] %vm305_vm3, %v1840_v0  ;;  %321 = vst.msk [vmem:[#allocation3 + $0x38] sm:$0xff] %vm305_vm3, %v1840_v0  ;;  %1608 = vset.pattern.permute.xlu1 %v1843_v54  ;;  %v2198_v55 = vld [vmem:[#allocation2] sm:$0xff]  ;;  %v2200_v57 = vld [vmem:[#allocation2 + $0x8] sm:$0xff] }
  0x87   : > { %v2205_v60 = vld [vmem:[#allocation2 + $0x10] sm:$0xff]  ;;  %v2215_v1 = vld [vmem:[#allocation2 + $0x18] sm:$0xff]  ;;  %p1756_p6 = por %p1755_p1, %p1754_p12 }
  0x88   : > { %v2224_v5 = vld [vmem:[#allocation2 + $0x20] sm:$0xff]  ;;  %v2234_v8 = vld [vmem:[#allocation2 + $0x28] sm:$0xff] }
  0x89   : > { %v2243_v13 = vld [vmem:[#allocation2 + $0x30] sm:$0xff]  ;;  %v2253_v16 = vld [vmem:[#allocation2 + $0x38] sm:$0xff]  ;;  %p1757_p13 = pnand %p1756_p6, %p1750_p9 }
  0x8a   : > { %1607 = vset.pattern.permute.xlu0 %v1843_v54 }
  0xe3   : > { %v367_v24 = vpop.trf.xlu0 }
  0xe4   : > { %1482 = vmatmul.mubr.msk.bf16.vlgmr.msra.gmra.mrb[0].mxu0 %vm322_vm0, %v367_v24  ;;  %v495_v27 = vpop.trf.xlu1  ;;  %v351_v24 = vld [vmem:[%s2275_s18] sm:$0xff] }
  0xe5   : > { %1492 = vmatpush3.bf16.msra.mxu0 %v507_v22  ;;  %1493 = vmatprep.mubr.msk.bf16.mxu0 %vm1841_vm1, %v1840_v0 }
  0xe6   : > { %1503 = vmatprep.subr.bf16.mxu0 %v1840_v0 }
  0xe7   : > { %v432_v26 = vpop.trf.xlu0 }
  0xe8   : > { %1488 = vmatmul.mubr.msk.bf16.vlgmr.msra.gmra.mrb[0].mxu1 %vm322_vm0, %v432_v26  ;;  %v558_v28 = vpop.trf.xlu1 }
  0xe9   : > { %1498 = vmatpush3.bf16.msra.mxu1 %v570_v25  ;;  %1499 = vmatprep.mubr.msk.bf16.mxu1 %vm1841_vm1, %v1840_v0  ;;  %v355_v25 = vpack.c.bf16 %v351_v24, %v351_v24 }
  0xea   : > { %1509 = vmatprep.subr.bf16.mxu1 %v1840_v0 }
  0xeb   : > { %v807_v26 = vsel %vm621_vm4, %v355_v25, 0 }
  0xec   : > { %1494 = vmatmul.mubr.msk.bf16.vlgmr.msra.gmra.mrb[4].mxu0 %vm322_vm0, %v495_v27  ;;  %v352_v27 = vld [vmem:[%s2275_s18 + $0x8] sm:$0xff] }
  0xed   : > { %1505 = vmatprep.mubr.msk.bf16.mxu0 %vm1841_vm1, %v1840_v0 }
  0xee   : > { %1504 = vmatpush3.bf16.xpose.msra.mxu0 %v807_v26 }
  0xef   : > { %1515 = vmatprep.subr.bf16.mxu0 %v1840_v0 }
  0xf0   : > { %1500 = vmatmul.mubr.msk.bf16.vlgmr.msra.gmra.mrb[4].mxu1 %vm322_vm0, %v558_v28  ;;  %v356_v28 = vpack.c.bf16 %v352_v27, %v352_v27 }
  0xf1   : > { %1511 = vmatprep.mubr.msk.bf16.mxu1 %vm1841_vm1, %v1840_v0 }
  0xf2   : > { %v854_v29 = vsel %vm621_vm4, %v356_v28, 0 }
  0xf3   : > { %1510 = vmatpush3.bf16.xpose.msra.mxu1 %v854_v29 }
  0xf4   : > { %1521 = vmatprep.subr.bf16.mxu1 %v1840_v0 }
 0x1b7   : > { %v2166_v30 = vpop.f32.mrb[0].mxu0 }
 0x1b8   : > { %v1483_v31 = vpop.f32.mrb[1].mxu0  ;;  %v622_v32 = vsel %vm621_vm4, %v2166_v30, -inf }
 0x1b9   : > { %623 = vmax.xlane.f32.xlu0 %v622_v32  ;;  %v2170_v33 = vpop.f32.mrb[2].mxu0 }
 0x1ba   : > { %v1484_v34 = vpop.f32.mrb[3].mxu0  ;;  %v625_v35 = vsel %vm621_vm4, %v2170_v33, -inf }
 0x1bb   : > { %626 = vmax.xlane.f32.xlu1 %v625_v35  ;;  %v2174_v36 = vpop.f32.mrb[0].mxu1 }
 0x1bc   : > { %v1489_v37 = vpop.f32.mrb[1].mxu1  ;;  %v628_v38 = vsel %vm621_vm4, %v2174_v36, -inf }
 0x1bd   : > { %629 = vmax.xlane.f32.xlu0 %v628_v38  ;;  %v2178_v39 = vpop.f32.mrb[2].mxu1 }
 0x1be   : > { %v1490_v40 = vpop.f32.mrb[3].mxu1  ;;  %v631_v41 = vsel %vm621_vm4, %v2178_v39, -inf }
 0x1bf   : > { %632 = vmax.xlane.f32.xlu1 %v631_v41  ;;  %v2182_v42 = vpop.f32.mrb[4].mxu0 }
 0x1c0   : > { %v1495_v43 = vpop.f32.mrb[5].mxu0  ;;  %v634_v44 = vsel %vm621_vm4, %v2182_v42, -inf }
 0x1c1   : > { %v2186_v45 = vpop.f32.mrb[6].mxu0  ;;  %635 = vmax.xlane.f32.xlu0 %v634_v44 }
 0x1c2   : > { %v1496_v46 = vpop.f32.mrb[7].mxu0  ;;  %v637_v47 = vsel %vm621_vm4, %v2186_v45, -inf }
 0x1c3   : > { %v2190_v48 = vpop.f32.mrb[4].mxu1  ;;  %638 = vmax.xlane.f32.xlu1 %v637_v47 }
 0x1c4   : > { %v1501_v49 = vpop.f32.mrb[5].mxu1  ;;  %v640_v50 = vsel %vm621_vm4, %v2190_v48, -inf }
 0x1c5   : > { %v2194_v51 = vpop.f32.mrb[6].mxu1  ;;  %641 = vmax.xlane.f32.xlu0 %v640_v50 }
 0x1c6   : > { %v1502_v52 = vpop.f32.mrb[7].mxu1  ;;  %v643_v53 = vsel %vm621_vm4, %v2194_v51, -inf }
 0x1c7   : > { %644 = vmax.xlane.f32.xlu1 %v643_v53  ;;  %v353_v52 = vld [vmem:[%s2275_s18 + $0x10] sm:$0xff] }
 0x246   : > { %v624_v56 = vpop.xlane.xlu0 %623 }
 0x247   : > { %v2203_v58 = vmax.f32 %v2198_v55, %v624_v56 }
 0x248   : > { %v627_v59 = vpop.xlane.xlu1 %626 }
 0x249   : > { %v654_v61 = vsub.f32 %v2198_v55, %v2203_v58  ;;  %1063 = vst.msk [vmem:[#allocation2] sm:$0xff] %vm305_vm3, %v2203_v58  ;;  %v2212_v62 = vmax.f32 %v2200_v57, %v627_v59  ;;  %680 = vperm.xlu0 %1607, %v2203_v58   ;;  %v357_v59 = vpack.c.bf16 %v353_v52, %v353_v52 }
 0x24a   : > { %v630_v63 = vpop.xlane.xlu0 %629 }
 0x24b   : > { %v655_v2 = vsub.f32 %v2200_v57, %v2212_v62  ;;  %1064 = vst.msk [vmem:[#allocation2 + $0x8] sm:$0xff] %vm305_vm3, %v2212_v62  ;;  %v2222_v3 = vmax.f32 %v2205_v60, %v630_v63  ;;  %v354_v63 = vld [vmem:[%s2275_s18 + $0x18] sm:$0xff] }
 0x24c   : > { %v633_v4 = vpop.xlane.xlu1 %632  ;;  %v358_v24 = vpack.c.bf16 %v354_v63, %v354_v63  ;;  %v748_v63 = vld [vmem:[#allocation3 + $0x30] sm:$0xff] }
 0x24d   : > { %v656_v6 = vsub.f32 %v2205_v60, %v2222_v3  ;;  %1065 = vst.msk [vmem:[#allocation2 + $0x10] sm:$0xff] %vm305_vm3, %v2222_v3  ;;  %v2231_v7 = vmax.f32 %v2215_v1, %v633_v4  ;;  %690 = vperm.xlu1 %1608, %v2222_v3  }
 0x24e   : > { %v636_v9 = vpop.xlane.xlu0 %635 }
 0x24f   : > { %v657_v10 = vsub.f32 %v2215_v1, %v2231_v7  ;;  %1066 = vst.msk [vmem:[#allocation2 + $0x18] sm:$0xff] %vm305_vm3, %v2231_v7  ;;  %v2241_v11 = vmax.f32 %v2224_v5, %v636_v9 }
 0x250   : > { %v639_v12 = vpop.xlane.xlu1 %638 }
 0x251   : > { %685 = vperm.xlu1 %1608, %v2212_v62   ;;  %v2247_v14 = vmax.f32 %v2234_v8, %v639_v12  ;;  %v658_v15 = vsub.f32 %v2224_v5, %v2241_v11  ;;  %1067 = vst.msk [vmem:[#allocation2 + $0x20] sm:$0xff] %vm305_vm3, %v2241_v11  ;;  %v668_v55 = vmul.f32 1.442695, %v657_v10 }
 0x252   : > { %v642_v17 = vpop.xlane.xlu0 %641 }
 0x253   : > { %v659_v18 = vsub.f32 %v2234_v8, %v2247_v14  ;;  %1068 = vst.msk [vmem:[#allocation2 + $0x28] sm:$0xff] %vm305_vm3, %v2247_v14  ;;  %v2260_v19 = vmax.f32 %v2243_v13, %v642_v17 }
 0x254   : > { %v645_v20 = vpop.xlane.xlu1 %644 }
 0x255   : > { %695 = vperm.xlu1 %1608, %v2231_v7   ;;  %v2264_v21 = vmax.f32 %v2253_v16, %v645_v20  ;;  %v660_v22 = vsub.f32 %v2243_v13, %v2260_v19  ;;  %1069 = vst.msk [vmem:[#allocation2 + $0x30] sm:$0xff] %vm305_vm3, %v2260_v19  ;;  %v672_v58 = vmul.f32 1.442695, %v659_v18  ;;  %v742_v7 = vld [vmem:[#allocation3] sm:$0xff] }
 0x257   : > { %v661_v23 = vsub.f32 %v2253_v16, %v2264_v21  ;;  %1070 = vst.msk [vmem:[#allocation2 + $0x38] sm:$0xff] %vm305_vm3, %v2264_v21  ;;  %v743_v16 = vld [vmem:[#allocation3 + $0x8] sm:$0xff] }
 0x259   : > { %700 = vperm.xlu1 %1608, %v2241_v11   ;;  %v676_v60 = vmul.f32 1.442695, %v661_v23  ;;  %v744_v11 = vld [vmem:[#allocation3 + $0x10] sm:$0xff] }
 0x25d   : > { %710 = vperm.xlu1 %1608, %v2260_v19  }
 0x261   : > { %705 = vperm.xlu1 %1608, %v2247_v14  }
 0x265   : > { %715 = vperm.xlu1 %1608, %v2264_v21  }
 0x2c8   : > { %v681_v31 = vpop.permute.xlu0 %680 }
 0x2c9   : > { %v718_v32 = vsub.f32 %v2166_v30, %v681_v31  ;;  %v948_v31 = vsel %vm621_vm4, %v358_v24, 0 }
 0x2cb   : > { %v726_v34 = vmul.f32 1.442695, %v718_v32 }
 0x2cc   : > { %v691_v35 = vpop.permute.xlu1 %690 }
 0x2cd   : > { %1609 = vpow2.f32 %v726_v34  ;;  %v720_v37 = vsub.f32 %v2174_v36, %v691_v35 }
 0x2cf   : > { %v730_v38 = vmul.f32 1.442695, %v720_v37 }
 0x2d0   : > { %v686_v40 = vpop.permute.xlu1 %685 }
 0x2d1   : > { %1611 = vpow2.f32 %v730_v38  ;;  %v719_v41 = vsub.f32 %v2170_v33, %v686_v40 }
 0x2d3   : > { %v728_v43 = vmul.f32 1.442695, %v719_v41 }
 0x2d4   : > { %v696_v44 = vpop.permute.xlu1 %695 }
 0x2d5   : > { %1613 = vpow2.f32 %v728_v43  ;;  %v721_v46 = vsub.f32 %v2178_v39, %v696_v44 }
 0x2d7   : > { %v1610_v47 = vpop.eup %1609  ;;  %v732_v49 = vmul.f32 1.442695, %v721_v46 }
 0x2d8   : > { %v701_v30 = vpop.permute.xlu1 %700  ;;  %v758_v50 = vsel %vm621_vm4, %v1610_v47, 0.0 }
 0x2d9   : > { %1615 = vpow2.f32 %v732_v49  ;;  %v722_v36 = vsub.f32 %v2182_v42, %v701_v30  ;;  %759 = vadd.xlane.f32.xlu1 %v758_v50  ;;  %v901_v42 = vsel %vm621_vm4, %v357_v59, 0  ;;  %v670_v49 = vmul.f32 1.442695, %v658_v15 }
 0x2da   : > { %v674_v30 = vmul.f32 1.442695, %v660_v22  ;;  %v664_v50 = vmul.f32 1.442695, %v655_v2  ;;  %v745_v22 = vld [vmem:[#allocation3 + $0x18] sm:$0xff] }
 0x2db   : > { %v1612_v53 = vpop.eup %1611  ;;  %v734_v54 = vmul.f32 1.442695, %v722_v36 }
 0x2dc   : > { %v711_v56 = vpop.permute.xlu1 %710  ;;  %v764_v33 = vsel %vm621_vm4, %v1612_v53, 0.0 }
 0x2dd   : > { %1617 = vpow2.f32 %v734_v54  ;;  %v724_v39 = vsub.f32 %v2190_v48, %v711_v56  ;;  %765 = vadd.xlane.f32.xlu0 %v764_v33  ;;  %v746_v54 = vld [vmem:[#allocation3 + $0x20] sm:$0xff] }
 0x2df   : > { %v1614_v4 = vpop.eup %1613  ;;  %v738_v9 = vmul.f32 1.442695, %v724_v39 }
 0x2e0   : > { %v706_v12 = vpop.permute.xlu1 %705  ;;  %v761_v17 = vsel %vm621_vm4, %v1614_v4, 0.0  ;;  %v799_v20 = vpack.c.bf16 %v1614_v4, %v1610_v47  ;;  %v662_v47 = vmul.f32 1.442695, %v654_v61 }
 0x2e1   : > { %1619 = vpow2.f32 %v738_v9  ;;  %v723_v25 = vsub.f32 %v2186_v45, %v706_v12  ;;  %762 = vadd.xlane.f32.xlu0 %v761_v17 }
 0x2e2   : > { %1506 = vmatmul.mubr.msk.bf16.vlgmr.msra.gmra.mrb[8].mxu0 %vm621_vm4, %v799_v20  ;;  %v747_v20 = vld [vmem:[#allocation3 + $0x28] sm:$0xff] }
 0x2e3   : > { %v1616_v26 = vpop.eup %1615  ;;  %v736_v27 = vmul.f32 1.442695, %v723_v25  ;;  %1516 = vmatpush3.bf16.xpose.msra.mxu0 %v901_v42  ;;  %1517 = vmatprep.mubr.msk.bf16.mxu0 %vm1841_vm1, %v1840_v0 }
 0x2e4   : > { %v716_v48 = vpop.permute.xlu1 %715  ;;  %v767_v28 = vsel %vm621_vm4, %v1616_v26, 0.0  ;;  %v800_v29 = vpack.c.bf16 %v1616_v26, %v1612_v53 }
 0x2e5   : > { %1621 = vpow2.f32 %v736_v27  ;;  %v725_v32 = vsub.f32 %v2194_v51, %v716_v48  ;;  %768 = vadd.xlane.f32.xlu1 %v767_v28  ;;  %v749_v48 = vld [vmem:[#allocation3 + $0x38] sm:$0xff] }
 0x2e6   : > { %1512 = vmatmul.mubr.msk.bf16.vlgmr.msra.gmra.mrb[8].mxu1 %vm621_vm4, %v800_v29 }
 0x2e7   : > { %v1618_v45 = vpop.eup %1617  ;;  %v740_v34 = vmul.f32 1.442695, %v725_v32  ;;  %1522 = vmatpush3.bf16.xpose.msra.mxu1 %v948_v31  ;;  %1523 = vmatprep.mubr.msk.bf16.mxu1 %vm1841_vm1, %v1840_v0  ;;  %v666_v0 = vmul.f32 1.442695, %v656_v6 }
 0x2e8   : > { %v770_v35 = vsel %vm621_vm4, %v1618_v45, 0.0 }
 0x2e9   : > { %1623 = vpow2.f32 %v740_v34  ;;  %771 = vadd.xlane.f32.xlu0 %v770_v35 }
 0x2ea   : > { %1625 = vpow2.f32 %v666_v0 }
 0x2eb   : > { %v1620_v37 = vpop.eup %1619  ;;  %1627 = vpow2.f32 %v662_v47 }
 0x2ec   : > { %v776_v38 = vsel %vm621_vm4, %v1620_v37, 0.0  ;;  %1629 = vpow2.f32 %v670_v49 }
 0x2ed   : > { %777 = vadd.xlane.f32.xlu1 %v776_v38  ;;  %1631 = vpow2.f32 %v674_v30  ;;  %v991_v30 = vld [vmem:[#allocation4] sm:$0xff] }
 0x2ee   : > { %1633 = vpow2.f32 %v664_v50 }
 0x2ef   : > { %v1622_v40 = vpop.eup %1621  ;;  %1635 = vpow2.f32 %v668_v55  ;;  %v992_v55 = vld [vmem:[#allocation4 + $0x8] sm:$0xff] }
 0x2f0   : > { %v773_v51 = vsel %vm621_vm4, %v1622_v40, 0.0  ;;  %v801_v41 = vpack.c.bf16 %v1622_v40, %v1618_v45  ;;  %1637 = vpow2.f32 %v672_v58 }
 0x2f1   : > { %774 = vadd.xlane.f32.xlu0 %v773_v51  ;;  %1639 = vpow2.f32 %v676_v60 }
 0x2f2   : > { %1518 = vmatmul.mubr.msk.bf16.vlgmr.msra.gmra.mrb[12].mxu0 %vm621_vm4, %v801_v41 }
 0x2f3   : > { %v1624_v43 = vpop.eup %1623 }
 0x2f4   : > { %v779_v44 = vsel %vm621_vm4, %v1624_v43, 0.0  ;;  %v802_v46 = vpack.c.bf16 %v1624_v43, %v1620_v37  ;;  %v1626_v61 = vpop.eup %1625 }
 0x2f5   : > { %780 = vadd.xlane.f32.xlu1 %v779_v44  ;;  %v1628_v3 = vpop.eup %1627  ;;  %v752_v14 = vmul.f32 %v1626_v61, %v744_v11 }
 0x2f6   : > { %1524 = vmatmul.mubr.msk.bf16.vlgmr.msra.gmra.mrb[12].mxu1 %vm621_vm4, %v802_v46  ;;  %v1630_v57 = vpop.eup %1629  ;;  %v750_v8 = vmul.f32 %v1628_v3, %v742_v7 }
 0x2f7   : > { %v1632_v62 = vpop.eup %1631  ;;  %v754_v59 = vmul.f32 %v1630_v57, %v746_v54 }
 0x2f8   : > { %v1634_v1 = vpop.eup %1633  ;;  %v756_v12 = vmul.f32 %v1632_v62, %v748_v63 }
 0x2f9   : > { %v1636_v2 = vpop.eup %1635  ;;  %v751_v19 = vmul.f32 %v1634_v1, %v743_v16 }
 0x2fa   : > { %v1638_v5 = vpop.eup %1637  ;;  %v753_v52 = vmul.f32 %v1636_v2, %v745_v22  ;;  %v996_v22 = vld [vmem:[#allocation4 + $0x28] sm:$0xff] }
 0x2fb   : > { %v1640_v6 = vpop.eup %1639  ;;  %v755_v26 = vmul.f32 %v1638_v5, %v747_v20 }
 0x2fc   : > { %v757_v32 = vmul.f32 %v1640_v6, %v749_v48 }
 0x306   : > { %1011 = vperm.xlu1 %1608, %v1626_v61   ;;  %v993_v61 = vld [vmem:[#allocation4 + $0x10] sm:$0xff] }
 0x307   : > { %1001 = vperm.xlu0 %1607, %v1628_v3  }
 0x30a   : > { %1021 = vperm.xlu1 %1608, %v1630_v57  }
 0x30b   : > { %1031 = vperm.xlu0 %1607, %v1632_v62  }
 0x30e   : > { %1006 = vperm.xlu1 %1608, %v1634_v1  }
 0x30f   : > { %1016 = vperm.xlu0 %1607, %v1636_v2   ;;  %v994_v2 = vld [vmem:[#allocation4 + $0x18] sm:$0xff] }
 0x312   : > { %1026 = vperm.xlu1 %1608, %v1638_v5  }
 0x313   : > { %1036 = vperm.xlu0 %1607, %v1640_v6  }
 0x366   : > { %v760_v10 = vpop.xlane.xlu1 %759 }
 0x367   : > { %v782_v13 = vadd.f32 %v760_v10, %v750_v8 }
 0x369   : > { %791 = vst.msk [vmem:[#allocation3] sm:$0xff] %vm305_vm3, %v782_v13 }
 0x36a   : > { %v766_v15 = vpop.xlane.xlu0 %765 }
 0x36b   : > { %v784_v18 = vadd.f32 %v766_v15, %v752_v14 }
 0x36d   : > { %793 = vst.msk [vmem:[#allocation3 + $0x10] sm:$0xff] %vm305_vm3, %v784_v18 }
 0x36e   : > { %v763_v21 = vpop.xlane.xlu0 %762 }
 0x36f   : > { %v783_v23 = vadd.f32 %v763_v21, %v751_v19  ;;  %v995_v21 = vld [vmem:[#allocation4 + $0x20] sm:$0xff] }
 0x370   : > { %v1074_v36 = vld [vmem:[#allocation3] sm:$0xff] }
 0x371   : > { %792 = vst.msk [vmem:[#allocation3 + $0x8] sm:$0xff] %vm305_vm3, %v783_v23  ;;  %1641 = vrcp.f32 %v1074_v36 }
 0x372   : > { %v769_v53 = vpop.xlane.xlu1 %768 }
 0x373   : > { %v785_v56 = vadd.f32 %v769_v53, %v753_v52  ;;  %v997_v52 = vld [vmem:[#allocation4 + $0x30] sm:$0xff] }
 0x374   : > { %v1076_v33 = vld [vmem:[#allocation3 + $0x10] sm:$0xff] }
 0x375   : > { %794 = vst.msk [vmem:[#allocation3 + $0x18] sm:$0xff] %vm305_vm3, %v785_v56  ;;  %1643 = vrcp.f32 %v1076_v33 }
 0x376   : > { %v772_v39 = vpop.xlane.xlu0 %771 }
 0x377   : > { %v786_v4 = vadd.f32 %v772_v39, %v754_v59  ;;  %v998_v59 = vld [vmem:[#allocation4 + $0x38] sm:$0xff] }
 0x378   : > { %v1075_v9 = vld [vmem:[#allocation3 + $0x8] sm:$0xff] }
 0x379   : > { %795 = vst.msk [vmem:[#allocation3 + $0x20] sm:$0xff] %vm305_vm3, %v786_v4  ;;  %1645 = vrcp.f32 %v1075_v9 }
 0x37a   : > { %v778_v17 = vpop.xlane.xlu1 %777 }
 0x37b   : > { %v1642_v42 = vpop.eup %1641  ;;  %v788_v24 = vadd.f32 %v778_v17, %v756_v12 }
 0x37c   : > { %1100 = vperm.xlu1 %1608, %v1642_v42   ;;  %v1077_v25 = vld [vmem:[#allocation3 + $0x18] sm:$0xff] }
 0x37d   : > { %797 = vst.msk [vmem:[#allocation3 + $0x30] sm:$0xff] %vm305_vm3, %v788_v24  ;;  %1647 = vrcp.f32 %v1077_v25 }
 0x37e   : > { %v775_v27 = vpop.xlane.xlu0 %774 }
 0x37f   : > { %v1644_v28 = vpop.eup %1643  ;;  %v787_v29 = vadd.f32 %v775_v27, %v755_v26 }
 0x380   : > { %1110 = vperm.xlu0 %1607, %v1644_v28   ;;  %v1078_v31 = vld [vmem:[#allocation3 + $0x20] sm:$0xff] }
 0x381   : > { %796 = vst.msk [vmem:[#allocation3 + $0x28] sm:$0xff] %vm305_vm3, %v787_v29  ;;  %1649 = vrcp.f32 %v1078_v31 }
 0x382   : > { %v781_v45 = vpop.xlane.xlu1 %780 }
 0x383   : > { %v1646_v34 = vpop.eup %1645  ;;  %v789_v35 = vadd.f32 %v781_v45, %v757_v32 }
 0x384   : > { %1105 = vperm.xlu1 %1608, %v1646_v34   ;;  %v1080_v37 = vld [vmem:[#allocation3 + $0x30] sm:$0xff] }
 0x385   : > { %798 = vst.msk [vmem:[#allocation3 + $0x38] sm:$0xff] %vm305_vm3, %v789_v35  ;;  %1651 = vrcp.f32 %v1080_v37 }
 0x386   : > { %v1012_v0 = vpop.permute.xlu1 %1011  ;;  %v1002_v47 = vpop.permute.xlu0 %1001 }
 0x387   : > { %v1648_v38 = vpop.eup %1647  ;;  %v1039_v60 = vmul.f32 %v1002_v47, %v991_v30  ;;  %v1041_v7 = vmul.f32 %v1012_v0, %v993_v61 }
 0x388   : > { %1115 = vperm.xlu0 %1607, %v1648_v38   ;;  %v1079_v40 = vld [vmem:[#allocation3 + $0x28] sm:$0xff] }
 0x389   : > { %1653 = vrcp.f32 %v1079_v40 }
 0x38a   : > { %v1022_v49 = vpop.permute.xlu1 %1021  ;;  %v1032_v50 = vpop.permute.xlu0 %1031 }
 0x38b   : > { %v1650_v51 = vpop.eup %1649  ;;  %v1043_v36 = vmul.f32 %v1022_v49, %v995_v21  ;;  %v1045_v4 = vmul.f32 %v1032_v50, %v997_v52 }
 0x38c   : > { %1120 = vperm.xlu1 %1608, %v1650_v51   ;;  %v1081_v41 = vld [vmem:[#allocation3 + $0x38] sm:$0xff] }
 0x38d   : > { %1655 = vrcp.f32 %v1081_v41 }
 0x38e   : > { %v1007_v58 = vpop.permute.xlu1 %1006  ;;  %v1017_v5 = vpop.permute.xlu0 %1016 }
 0x38f   : > { %v1652_v43 = vpop.eup %1651  ;;  %v1040_v57 = vmul.f32 %v1007_v58, %v992_v55  ;;  %v1042_v13 = vmul.f32 %v1017_v5, %v994_v2 }
 0x390   : > { %1130 = vperm.xlu0 %1607, %v1652_v43  }
 0x392   : > { %v1027_v23 = vpop.permute.xlu1 %1026  ;;  %v1037_v39 = vpop.permute.xlu0 %1036 }
 0x393   : > { %v1654_v44 = vpop.eup %1653  ;;  %v1044_v54 = vmul.f32 %v1027_v23, %v996_v22  ;;  %v1046_v20 = vmul.f32 %v1037_v39, %v998_v59 }
 0x394   : > { %1125 = vperm.xlu1 %1608, %v1654_v44  }
 0x397   : > { %v1656_v46 = vpop.eup %1655 }
 0x398   : > { %1135 = vperm.xlu0 %1607, %v1656_v46  }
 0x3b5   : > { %v843_v3 = vpop.f32.mrb[8].mxu0 }
 0x3b6   : > { %v1047_v62 = vadd.f32 %v1039_v60, %v843_v3  ;;  %v1507_v1 = vpop.f32.mrb[9].mxu0 }
 0x3b7   : > { %v846_v6 = vpop.f32.mrb[10].mxu0 }
 0x3b8   : > { %1055 = vst.msk [vmem:[#allocation4] sm:$0xff] %vm322_vm0, %v1047_v62  ;;  %v1048_v8 = vadd.f32 %v1040_v57, %v846_v6  ;;  %v1508_v10 = vpop.f32.mrb[11].mxu0 }
 0x3b9   : > { %v890_v11 = vpop.f32.mrb[8].mxu1 }
 0x3ba   : > { %1056 = vst.msk [vmem:[#allocation4 + $0x8] sm:$0xff] %vm322_vm0, %v1048_v8  ;;  %v1049_v14 = vadd.f32 %v1041_v7, %v890_v11  ;;  %v1513_v15 = vpop.f32.mrb[9].mxu1 }
 0x3bb   : > { %v893_v16 = vpop.f32.mrb[10].mxu1 }
 0x3bc   : > { %1057 = vst.msk [vmem:[#allocation4 + $0x10] sm:$0xff] %vm322_vm0, %v1049_v14  ;;  %v1050_v18 = vadd.f32 %v1042_v13, %v893_v16  ;;  %v1514_v19 = vpop.f32.mrb[11].mxu1 }
 0x3be   : > { %1058 = vst.msk [vmem:[#allocation4 + $0x18] sm:$0xff] %vm322_vm0, %v1050_v18 }
 0x3bf   : > { %v1090_v48 = vld [vmem:[#allocation4] sm:$0xff] }
 0x3c1   : > { %v1091_v34 = vld [vmem:[#allocation4 + $0x8] sm:$0xff] }
 0x3c3   : > { %v1092_v31 = vld [vmem:[#allocation4 + $0x10] sm:$0xff] }
 0x3c5   : > { %v937_v53 = vpop.f32.mrb[12].mxu0  ;;  %v1093_v38 = vld [vmem:[#allocation4 + $0x18] sm:$0xff] }
 0x3c6   : > { %v1051_v56 = vadd.f32 %v1043_v36, %v937_v53  ;;  %v1519_v33 = vpop.f32.mrb[13].mxu0 }
 0x3c7   : > { %v940_v63 = vpop.f32.mrb[14].mxu0 }
 0x3c8   : > { %1059 = vst.msk [vmem:[#allocation4 + $0x20] sm:$0xff] %vm322_vm0, %v1051_v56  ;;  %v1052_v9 = vadd.f32 %v1044_v54, %v940_v63  ;;  %v1520_v12 = vpop.f32.mrb[15].mxu0 }
 0x3c9   : > { %v984_v17 = vpop.f32.mrb[12].mxu1 }
 0x3ca   : > { %1060 = vst.msk [vmem:[#allocation4 + $0x28] sm:$0xff] %vm322_vm0, %v1052_v9  ;;  %v1053_v42 = vadd.f32 %v1045_v4, %v984_v17  ;;  %v1525_v24 = vpop.f32.mrb[13].mxu1 }
 0x3cb   : > { %v987_v25 = vpop.f32.mrb[14].mxu1 }
 0x3cc   : > { %1061 = vst.msk [vmem:[#allocation4 + $0x30] sm:$0xff] %vm322_vm0, %v1053_v42  ;;  %v1054_v26 = vadd.f32 %v1046_v20, %v987_v25  ;;  %v1526_v27 = vpop.f32.mrb[15].mxu1 }
 0x3ce   : > { %1062 = vst.msk [vmem:[#allocation4 + $0x38] sm:$0xff] %vm322_vm0, %v1054_v26 }
 0x3cf   : > { %v1094_v41 = vld [vmem:[#allocation4 + $0x20] sm:$0xff] }
 0x3d1   : > { %v1095_v46 = vld [vmem:[#allocation4 + $0x28] sm:$0xff] }
 0x3d3   : > { %v1096_v30 = vld [vmem:[#allocation4 + $0x30] sm:$0xff] }
 0x3d5   : > { %v1097_v58 = vld [vmem:[#allocation4 + $0x38] sm:$0xff] }
 0x3fb   : > { %v1101_v28 = vpop.permute.xlu1 %1100 }
 0x3fc   : > { %v1138_v29 = vmul.f32 %v1101_v28, %v1090_v48 }
 0x3fe   : > { %1146 = vxpose.xlu1.b32.start [1/2] (short) (narrow) %v1138_v29, 8 }
 0x3ff   : > { %v1111_v32 = vpop.permute.xlu0 %1110 }
 0x400   : > { %v1140_v45 = vmul.f32 %v1111_v32, %v1092_v31 }
 0x402   : > { %1178 = vxpose.xlu0.b32.start [1/2] (short) (narrow) %v1140_v45, 8 }
 0x403   : > { %v1106_v35 = vpop.permute.xlu1 %1105 }
 0x404   : > { %v1139_v37 = vmul.f32 %v1106_v35, %v1091_v34 }
 0x406   : > { %1147 = vxpose.xlu1.b32.end [2/2] (short) (narrow) %v1139_v37, 8 }
 0x407   : > { %v1116_v40 = vpop.permute.xlu0 %1115 }
 0x408   : > { %v1141_v51 = vmul.f32 %v1116_v40, %v1093_v38 }
 0x40a   : > { %1179 = vxpose.xlu0.b32.end [2/2] (short) (narrow) %v1141_v51, 8 }
 0x40b   : > { %v1121_v43 = vpop.permute.xlu1 %1120 }
 0x40c   : > { %v1142_v44 = vmul.f32 %v1121_v43, %v1094_v41 }
 0x40e   : > { %1210 = vxpose.xlu0.b32.start [1/2] (short) (narrow) %v1142_v44, 8 }
 0x40f   : > { %v1131_v49 = vpop.permute.xlu0 %1130 }
 0x410   : > { %v1144_v50 = vmul.f32 %v1131_v49, %v1096_v30 }
 0x413   : > { %v1126_v0 = vpop.permute.xlu1 %1125 }
 0x414   : > { %v1143_v47 = vmul.f32 %v1126_v0, %v1095_v46 }
 0x416   : > { %1211 = vxpose.xlu0.b32.end [2/2] (short) (narrow) %v1143_v47, 8 }
 0x417   : > { %v1136_v55 = vpop.permute.xlu0 %1135 }
 0x418   : > { %v1145_v60 = vmul.f32 %v1136_v55, %v1097_v58 }
 0x41a   : > { %1242 = vxpose.xlu0.b32.start [1/2] (short) (narrow) %v1144_v50, 8 }
 0x41e   : > { %1243 = vxpose.xlu0.b32.end [2/2] (short) (narrow) %v1145_v60, 8 }
 0x482   : > { %v1162_v61 = vpop.trf.xlu1 }
 0x483   : > { %1274 = vst.msk [vmem:[%s295_s24] sm:$0xff] %vm621_vm4, %v1162_v61 }
 0x486   : > { %v1194_v3 = vpop.trf.xlu0 }
 0x487   : > { %1275 = vst.msk [vmem:[%s295_s24 + $0x8] sm:$0xff] %vm621_vm4, %v1194_v3 }
 0x492   : > { %v1226_v57 = vpop.trf.xlu0 }
 0x493   : > { %1276 = vst.msk [vmem:[%s295_s24 + $0x10] sm:$0xff] %vm621_vm4, %v1226_v57 }
 0x49a   : > { %v1258_v62 = vpop.trf.xlu0 }
 0x49b   : > { %1277 = vst.msk [vmem:[%s295_s24 + $0x18] sm:$0xff] %vm621_vm4, %v1258_v62 }
 0x49c   : > { %1760 = shalt.err (!%p1757_p13)
}
 0x49d   : > { %s1761_s28 = scalar_lea.hbm %s2365_s30, 512  ;;  %s1765_s10 = scalar_lea.hbm %s2418_s3, 1024 }
 0x49e   : > { %p1762_p11 = scmp.ne.s32.totalorder %s2365_s30, %s1761_s28  ;;  %p1766_p7 = scmp.lt.u32.totalorder %s2365_s30, %s2418_s3 }
 0x49f   : > { %p1767_p4 = scmp.lt.u32.totalorder %s1765_s10, %s1761_s28  ;;  %p1769_p0 = scmp.lt.u32.totalorder %s1761_s28, %s2365_s30 }
 0x4a0   : > { %p1763_p2 = pnand %p1762_p11, %p2447_p10 }
 0x4a1   : > { %p1768_p3 = por %p1767_p4, %p1766_p7 }
 0x4a2   : > { %p1764_p5 = pneg %p1763_p2 }
 0x4a3   : > { %p1770_p8 = por %p1769_p0, %p1768_p3 }
 0x4a5   : > { %p1771_p9 = pnand %p1770_p8, %p1764_p5 }
 0x4a7   : > { %1774 = shalt.err (!%p1771_p9)
}
 0x4a8   : > { %s1845_s11 = smov 128   ;;  %s1846_s19 = smov 8  }
 0x4a9   : > { %1533 = dma.vmem_to_hbm [thread:$0]  (%p2447_p10), %s2360_s16, 512, %s2365_s30, %s1279_s6, %s1845_s11, %s1845_s11, %s1846_s19  }
 0x4aa PF: > { %s1308_s9 = sand.u32 1, %s1813_s12   ;;  %p2448_p12 = scmp.ne.s32.totalorder %s2435_s27, 0 }
 0x4ab   : > { %p2449_p1 = scmp.ge.s32.totalorder %s1833_s17, 2  ;;  %s1309_s18 = scalar_lea.sflag [#allocation7], %s1308_s9 }
 0x4ad   : > { %p1546_p6 = pnand %p2449_p1, %p2448_p12 }
 0x4af   : > { %1808 = dma.done.wait (!%p1546_p6), %s1309_s18, 512  }
 0x4b0   : > { %1810 = vsyncadd (!%p1546_p6), %s1309_s18, 4294966784  ;;  %s22_s17 = sadd.s32 1, %s1833_s17   ;;  %s2450_s24 = sld [smem:[#allocation17_spill]] }
 0x4b1   : > { %p19_p13 = scmp.ge.s32.totalorder %s22_s17, 4   ;;  %s2451_s15 = sld [smem:[#allocation15_spill]] }
 0x4b2   : > { %s2452_s16 = sld [smem:[#allocation16_spill]]  ;;  %s2453_s12 = smov %s1817_s13 }
 0x4b3   : > { %s2454_s13 = smov %s1821_s14  ;;  %21 = sbr.rel (!%p19_p13) target bundleno = 10 (0xa), region = 109 }
 0x4b6   : > { %s2455_s14 = smov %s2450_s24 }
 0x4ba   :  { %1314 = vsyncpa [#allocation6], 1 }
 0x4bb   :  { %1316 = vsyncpa [#allocation6 + $0x1], 1 }
 0x4bc   :  { %1317 = vsyncpa [#allocation9], 1 }
 0x4bd   :  { %1319 = vsyncpa [#allocation9 + $0x1], 1 }
 0x4be   :  { %1320 = vsyncpa [#allocation7], 1 }
 0x4bf   :  { %1322 = vsyncpa [#allocation7 + $0x1], 1 }

</bundles_post_ra>
